<compile_context>
chip_gen: v6e
topology: v6e:2x2x1
jax: 0.10.0
libtpu: 0.0.40
codegen_flags: <defaults>
</compile_context>

<pallas_src>
import jax
import jax.numpy as jnp
from jax.experimental import pallas as pl
from jax.experimental.pallas import tpu as pltpu


LANE = 128  # TPU vreg lane width


def coattn_kernel(vc_ref, wc_ref, bq_ref, wx_ref, bx_ref, o_ref):
    # vc_ref : (row_tile, Dv+Dl)   fused [v | q] rows (q already broadcast over K)
    # wc_ref : (Dv+Dl, Dm)         fused [Wv^T ; Wq^T]
    # bq_ref : (1, Dm)    float32
    # wx_ref : (Dm, G_pad)         zero-padded glimpse weight (lane-dense)
    # bx_ref : (1, G_pad) float32
    # o_ref  : (row_tile, G_pad)
    h = jnp.dot(vc_ref[...], wc_ref[...],
                preferred_element_type=jnp.float32) + bq_ref[...]
    x = jnp.maximum(h, 0.0).astype(wx_ref.dtype)
    out = jnp.dot(x, wx_ref[...],
                  preferred_element_type=jnp.float32) + bx_ref[...]
    o_ref[...] = out.astype(o_ref.dtype)


def _pick_row_tile(total_rows, itemsize):
    """VMEM-aware default row tile.

    * cap ~1024 rows for f32 inputs / ~2048 for bf16 (keeps the per-step
      working set well under v5e's 16 MiB scoped default and v7x's 64 MiB
      physical VMEM, with double-buffering headroom),
    * prefer >= 2 grid steps so v7x's two TensorCores both get work,
    * must be a multiple of 8 and divide total_rows; otherwise fall back to
      the full extent (single step), which the (8,128) BlockSpec rule allows.
    """
    cap = 2048 if itemsize < 4 else 1024
    target = min(cap, total_rows)
    if total_rows >= 16:
        target = min(target, max(8, total_rows // 2))
    target -= target % 8
    t = target
    while t >= 8:
        if total_rows % t == 0:
            return t
        t -= 8
    return total_rows


def co_attention(v, q, wv_t, wq_t, bq, wx_t, bx, *,
                 row_tile=None, compute_dtype=None):
    """v: (B, K, Dv), q: (B, Dl). Weights pre-transposed to (in, out).

    row_tile     : flattened rows (B*K) per grid step. Default: VMEM-aware
                   auto-pick giving >=2 steps when possible (see _pick_row_tile).
    compute_dtype: optional dtype (e.g. jnp.bfloat16) for the activations and
                   weight matrices on the MXU (v6e/v7x bf16 path). Biases stay
                   f32 and accumulation is always f32.
    """
    B, K, Dv = v.shape
    Dl = q.shape[1]
    Dm = wv_t.shape[1]
    G = wx_t.shape[1]
    out_dtype = v.dtype

    # ---- fuse the two input projections in the wrapper (XLA side) ---------
    rows = B * K
    v_flat = v.reshape(rows, Dv)
    q_rep = jnp.broadcast_to(q[:, None, :], (B, K, Dl)).reshape(rows, Dl)
    v_cat = jnp.concatenate([v_flat, q_rep], axis=1)          # (rows, Dv+Dl)
    w_cat = jnp.concatenate([wv_t, wq_t], axis=0)             # (Dv+Dl, Dm)

    # ---- lane-dense output: pad glimpse dim G -> multiple of 128 ----------
    G_pad = max(LANE, ((G + LANE - 1) // LANE) * LANE)
    wx_pad = jnp.zeros((Dm, G_pad), wx_t.dtype).at[:, :G].set(wx_t)
    bx_pad = jnp.zeros((1, G_pad), jnp.float32).at[0, :G].set(
        bx.astype(jnp.float32))
    bq2 = bq.astype(jnp.float32).reshape(1, Dm)

    if compute_dtype is not None:
        v_cat = v_cat.astype(compute_dtype)
        w_cat = w_cat.astype(compute_dtype)
        wx_pad = wx_pad.astype(compute_dtype)
        # bq2 / bx_pad intentionally remain f32 (added to f32 accumulators).

    Dc = Dv + Dl

    if row_tile is None:
        row_tile = _pick_row_tile(rows, jnp.dtype(v_cat.dtype).itemsize)
    assert rows % row_tile == 0, "row_tile must divide B*K"
    assert row_tile % 8 == 0 or row_tile == rows, \
        "row_tile must be a multiple of 8 (or the full B*K extent)"
    grid = (rows // row_tile,)

    itemsize = lambda a: a.size * a.dtype.itemsize
    flops = 2 * rows * Dc * Dm + 2 * rows * Dm * G_pad
    bytes_accessed = (itemsize(v_cat) + itemsize(w_cat) + itemsize(bq2)
                      + itemsize(wx_pad) + itemsize(bx_pad)
                      + rows * G_pad * jnp.dtype(out_dtype).itemsize)

    out_flat = pl.pallas_call(
        coattn_kernel,
        out_shape=jax.ShapeDtypeStruct((rows, G_pad), out_dtype),
        grid_spec=pltpu.PrefetchScalarGridSpec(
            num_scalar_prefetch=0,
            grid=grid,
            in_specs=[
                pl.BlockSpec((row_tile, Dc), lambda i: (i, 0)),   # [v|q] rows
                # Weights/biases: constant index maps -> resident across steps.
                pl.BlockSpec((Dc, Dm), lambda i: (0, 0)),         # [Wv^T;Wq^T]
                pl.BlockSpec((1, Dm), lambda i: (0, 0)),          # bq (f32)
                pl.BlockSpec((Dm, G_pad), lambda i: (0, 0)),      # Wx^T padded
                pl.BlockSpec((1, G_pad), lambda i: (0, 0)),       # bx padded
            ],
            out_specs=pl.BlockSpec((row_tile, G_pad), lambda i: (i, 0)),
        ),
        compiler_params=pltpu.CompilerParams(
            dimension_semantics=("parallel",)),
        cost_estimate=pl.CostEstimate(
            flops=flops, transcendentals=0, bytes_accessed=bytes_accessed),
    )(v_cat, w_cat, bq2, wx_pad, bx_pad)

    return out_flat[:, :G].reshape(B, K, G)


def reference(v, q, wv_t, wq_t, bq, wx_t, bx):
    vp = v @ wv_t
    qp = q @ wq_t + bq
    x = jax.nn.relu(vp + qp[:, None, :])
    return x @ wx_t + bx


if __name__ == "__main__":
    # Small shapes consistent with the module:
    #   D_VISION=64, D_LANGUAGE=32, D_MODEL=128, GLIMPSES=8, B=2, K=16 regions.
    B, K = 2, 16
    D_VISION, D_LANGUAGE, D_MODEL, GLIMPSES = 64, 32, 128, 8

    key = jax.random.PRNGKey(0)
    k_v, k_q, k_wv, k_wq, k_bq, k_wx, k_bx = jax.random.split(key, 7)

    v = jax.random.normal(k_v, (B, K, D_VISION), dtype=jnp.float32)
    q = jax.random.normal(k_q, (B, D_LANGUAGE), dtype=jnp.float32)

    # Deterministic parameter init (nn.Linear weights, stored transposed).
    wv_t = 0.05 * jax.random.normal(k_wv, (D_VISION, D_MODEL), dtype=jnp.float32)   # v_conv (no bias)
    wq_t = 0.05 * jax.random.normal(k_wq, (D_LANGUAGE, D_MODEL), dtype=jnp.float32) # q_lin
    bq = 0.05 * jax.random.normal(k_bq, (D_MODEL,), dtype=jnp.float32)
    wx_t = 0.05 * jax.random.normal(k_wx, (D_MODEL, GLIMPSES), dtype=jnp.float32)   # x_conv
    bx = 0.05 * jax.random.normal(k_bx, (GLIMPSES,), dtype=jnp.float32)

    ref = reference(v, q, wv_t, wq_t, bq, wx_t, bx)

    # f32 path (tight check).
    out = co_attention(v, q, wv_t, wq_t, bq, wx_t, bx)
    out = jax.block_until_ready(out)
    assert out.shape == (B, K, GLIMPSES)
    assert jnp.allclose(out, ref, atol=1e-4, rtol=1e-4)

    # bf16 MXU path (v6e/v7x); biases / accumulation stay f32, loose check.
    out_bf16 = co_attention(v, q, wv_t, wq_t, bq, wx_t, bx,
                            compute_dtype=jnp.bfloat16)
    out_bf16 = jax.block_until_ready(out_bf16)
    assert out_bf16.shape == (B, K, GLIMPSES)
    assert jnp.allclose(out_bf16, ref, atol=5e-2, rtol=5e-2)

    print("KERNEL_OK")
</pallas_src>

<mosaic_0001>
module attributes {stable_mosaic.version = 11 : i64} {
  func.func @coattn_kernel(%arg0: i32, %arg1: memref<16x96xf32, #tpu.memory_space<vmem>>, %arg2: memref<96x128xf32, #tpu.memory_space<vmem>>, %arg3: memref<1x128xf32, #tpu.memory_space<vmem>>, %arg4: memref<128x128xf32, #tpu.memory_space<vmem>>, %arg5: memref<1x128xf32, #tpu.memory_space<vmem>>, %arg6: memref<16x128xf32, #tpu.memory_space<vmem>>) attributes {dimension_semantics = [#tpu.dimension_semantics<parallel>], iteration_bounds = array<i64: 2>, scalar_prefetch = 0 : i64, scratch_operands = 0 : i64, tpu.core_type = #tpu.core_type<tc>, window_params = [{transform_indices = @transform_0, window_bounds = array<i64: 16, 96>}, {pipeline_mode = #tpu.pipeline_mode<synchronous>, transform_indices = @transform_1, window_bounds = array<i64: 96, 128>}, {pipeline_mode = #tpu.pipeline_mode<synchronous>, transform_indices = @transform_2, window_bounds = array<i64: 1, 128>}, {pipeline_mode = #tpu.pipeline_mode<synchronous>, transform_indices = @transform_3, window_bounds = array<i64: 128, 128>}, {pipeline_mode = #tpu.pipeline_mode<synchronous>, transform_indices = @transform_4, window_bounds = array<i64: 1, 128>}, {transform_indices = @transform_5, window_bounds = array<i64: 16, 128>}]} {
    %c0 = arith.constant 0 : index
    %c0_0 = arith.constant 0 : index
    %0 = vector.load %arg1[%c0, %c0_0] : memref<16x96xf32, #tpu.memory_space<vmem>>, vector<16x96xf32>
    %c0_1 = arith.constant 0 : index
    %c0_2 = arith.constant 0 : index
    %1 = vector.load %arg2[%c0_1, %c0_2] : memref<96x128xf32, #tpu.memory_space<vmem>>, vector<96x128xf32>
    %cst = arith.constant dense<0.000000e+00> : vector<16x128xf32>
    %2 = tpu.matmul %0, %1, %cst {dimension_numbers = #tpu.dot_dimension_numbers<[1], [0], [0], [1], [0, 0, 1, 1], [], []>} : vector<16x96xf32>, vector<96x128xf32>, vector<16x128xf32> -> vector<16x128xf32>
    %c0_3 = arith.constant 0 : index
    %c0_4 = arith.constant 0 : index
    %3 = vector.load %arg3[%c0_3, %c0_4] : memref<1x128xf32, #tpu.memory_space<vmem>>, vector<1x128xf32>
    %4 = vector.broadcast %3 : vector<1x128xf32> to vector<16x128xf32>
    %5 = arith.addf %2, %4 : vector<16x128xf32>
    %cst_5 = arith.constant 0.000000e+00 : f32
    %6 = vector.broadcast %cst_5 : f32 to vector<16x128xf32>
    %7 = arith.maximumf %5, %6 : vector<16x128xf32>
    %c0_6 = arith.constant 0 : index
    %c0_7 = arith.constant 0 : index
    %8 = vector.load %arg4[%c0_6, %c0_7] : memref<128x128xf32, #tpu.memory_space<vmem>>, vector<128x128xf32>
    %cst_8 = arith.constant dense<0.000000e+00> : vector<16x128xf32>
    %9 = tpu.matmul %7, %8, %cst_8 {dimension_numbers = #tpu.dot_dimension_numbers<[1], [0], [0], [1], [0, 0, 1, 1], [], []>} : vector<16x128xf32>, vector<128x128xf32>, vector<16x128xf32> -> vector<16x128xf32>
    %c0_9 = arith.constant 0 : index
    %c0_10 = arith.constant 0 : index
    %10 = vector.load %arg5[%c0_9, %c0_10] : memref<1x128xf32, #tpu.memory_space<vmem>>, vector<1x128xf32>
    %11 = vector.broadcast %10 : vector<1x128xf32> to vector<16x128xf32>
    %12 = arith.addf %9, %11 : vector<16x128xf32>
    %c0_11 = arith.constant 0 : index
    %c0_12 = arith.constant 0 : index
    %13 = vector.load %arg6[%c0_11, %c0_12] : memref<16x128xf32, #tpu.memory_space<vmem>>, vector<16x128xf32>
    tpu.vector_store %arg6[%c0_11, %c0_12], %12 {strides = array<i32>} : memref<16x128xf32, #tpu.memory_space<vmem>>, vector<16x128xf32>,
    return
  }
  func.func @transform_0(%arg0: i32) -> (i32, i32) {
    %c0_i32 = arith.constant 0 : i32
    %c0_i32_0 = arith.constant 0 : i32
    return %arg0, %c0_i32 : i32, i32
  }
  func.func @transform_1(%arg0: i32) -> (i32, i32) {
    %c0_i32 = arith.constant 0 : i32
    %c0_i32_0 = arith.constant 0 : i32
    %c0_i32_1 = arith.constant 0 : i32
    return %c0_i32, %c0_i32_0 : i32, i32
  }
  func.func @transform_2(%arg0: i32) -> (i32, i32) {
    %c0_i32 = arith.constant 0 : i32
    %c0_i32_0 = arith.constant 0 : i32
    %c0_i32_1 = arith.constant 0 : i32
    return %c0_i32, %c0_i32_0 : i32, i32
  }
  func.func @transform_3(%arg0: i32) -> (i32, i32) {
    %c0_i32 = arith.constant 0 : i32
    %c0_i32_0 = arith.constant 0 : i32
    %c0_i32_1 = arith.constant 0 : i32
    return %c0_i32, %c0_i32_0 : i32, i32
  }
  func.func @transform_4(%arg0: i32) -> (i32, i32) {
    %c0_i32 = arith.constant 0 : i32
    %c0_i32_0 = arith.constant 0 : i32
    %c0_i32_1 = arith.constant 0 : i32
    return %c0_i32, %c0_i32_0 : i32, i32
  }
  func.func @transform_5(%arg0: i32) -> (i32, i32) {
    %c0_i32 = arith.constant 0 : i32
    %c0_i32_0 = arith.constant 0 : i32
    return %arg0, %c0_i32 : i32, i32
  }
}

</mosaic_0001>

<bundles_post_ra>
// kernel: tpu_custom_call.1
= control target key start
LH: loop header
LB: loop body
LE: loop exit
PB: predicated region body
PF: predicated region fallthrough
CT: control target
= control target key end

     0   :  { %10 = vsyncpa [#allocation3], 0  ;;  %s1175_s0 = inlined_call_operand.hbm [shape: f32[32,96], index: 0, kind: input, shape index: {}]   ;;  %s1176_s1 = inlined_call_operand.hbm [shape: f32[96,128], index: 1, kind: input, shape index: {}]   ;;  %s1177_s2 = inlined_call_operand.vmem [shape: f32[1,128], index: 2, kind: input, shape index: {}]   ;;  %s1178_s3 = inlined_call_operand.hbm [shape: f32[128,128], index: 3, kind: input, shape index: {}]   ;;  %s1179_s4 = inlined_call_operand.vmem [shape: f32[1,128], index: 4, kind: input, shape index: {}]   ;;  %s1180_s5 = inlined_call_operand.hbm [shape: f32[32,128], index: 5, kind: output, shape index: {}]  }
   0x1   :  { %12 = vsyncpa [#allocation3 + $0x1], 0 }
   0x2   :  { %13 = vsyncpa [#allocation6], 0 }
   0x3   :  { %14 = vsyncpa [#allocation4], 0 }
   0x4   :  { %16 = vsyncpa [#allocation4 + $0x1], 0  ;;  %s962_s18 = smov 0   ;;  %s964_s19 = smov 0  }
   0x5   :  { %s966_s20 = smov 0   ;;  %s968_s21 = smov 0  }
   0x6 LB: > { %s983_s22 = sadd.s32 4294967295, %s922_s21   ;;  %s585_s23 = sadd.s32 4294967294, %s922_s21   ;;  %s922_s21 = sphi %s968_s21, %s1203_s21   ;;  %s918_s20 = sphi %s966_s20, %s1202_s20   ;;  %s914_s19 = sphi %s964_s19, %s1201_s19   ;;  %s910_s18 = sphi %s962_s18, %s1200_s18  }
   0x7   : > { %p42_p0 = scmp.ne.s32.totalorder %s914_s19, %s910_s18  ;;  %p1181_p1 = scmp.eq.s32.totalorder %s983_s22, 0 }
   0x8   : > { %p150_p2 = scmp.eq.s32.totalorder %s983_s22, 1  ;;  %p156_p3 = scmp.eq.s32.totalorder %s585_s23, 1 }
   0x9   : > { %p992_p4 = por %p1181_p1, %p42_p0  ;;  %p586_p5 = scmp.ge.s32.totalorder %s922_s21, 1 }
   0xa   : > { %p997_p6 = por %p156_p3, %p42_p0  ;;  %p163_p7 = scmp.lt.s32.totalorder %s922_s21, 3 }
   0xb   : > { %s1186_s24 = scalar_select %p992_p4, 1, 0 }
   0xc   : > { %s1187_s25 = scalar_select %p997_p6, 1, 0 }
   0xd   : > { %p1002_p8 = pnand %p586_p5, %p163_p7  ;;  %s924_s27 = smov [#allocation5]  }
   0xe   : > { %s175_s28 = sshll.u32 %s924_s27, 4  ;;  %s925_s30 = smov [#allocation7]   ;;  %s176_s28 = int_to_ptr.vmem [resolvable:$true] %s175_s28 }
   0xf   : > { %s1188_s26 = scalar_select %p1002_p8, 1, 0 }
  0x10   : > { %p715_p9 = pneg %p1002_p8  ;;  %s191_s6 = sshll.u32 %s925_s30, 4  ;;  %s192_s6 = int_to_ptr.vmem [resolvable:$true] %s191_s6 }
  0x11   : > { %s785_s7 = scalar_lea.vmem %s176_s28, 1536  ;;  %p793_p5 = scmp.lt.s32.totalorder %s176_s28, %s176_s28 }
  0x12   : > { %p1011_p11 = pnand %p715_p9, %p1181_p1  ;;  %p786_p13 = scmp.ne.s32.totalorder %s176_s28, %s785_s7 }
  0x13   : > { %p794_p7 = scmp.lt.s32.totalorder %s785_s7, %s785_s7 }
  0x14   : > { %p776_p12 = pneg %p1011_p11 }
  0x15   : > { %p795_p10 = por %p794_p7, %p793_p5 }
  0x16   : > { %p788_p0 = pnand %p786_p13, %p776_p12 }
  0x18   : > { %p789_p3 = pneg %p788_p0 }
  0x1a   : > { %p796_p9 = pnand %p795_p10, %p789_p3 }
  0x1c   : > { %799 = shalt.err (!%p796_p9)
}
  0x1d   : > { %s1182_s8 = smov 128   ;;  %s927_s9 = smov 8  }
  0x1e   : > { %718 = dma.hbm_to_vmem [thread:$0]  (!%p1011_p11), %s1176_s1, 1536, %s176_s28, [#allocation6], %s1182_s8, %s1182_s8, %s927_s9  }
  0x1f   : > { %s811_s12 = scalar_lea.vmem %s192_s6, 2048  ;;  %p819_p10 = scmp.lt.s32.totalorder %s192_s6, %s192_s6 }
  0x20   : > { %p812_p13 = scmp.ne.s32.totalorder %s192_s6, %s811_s12  ;;  %p820_p3 = scmp.lt.s32.totalorder %s811_s12, %s811_s12 }
  0x22   : > { %p814_p0 = pnand %p812_p13, %p776_p12  ;;  %p821_p7 = por %p820_p3, %p819_p10 }
  0x24   : > { %p815_p5 = pneg %p814_p0 }
  0x26   : > { %p822_p9 = pnand %p821_p7, %p815_p5 }
  0x28   : > { %825 = shalt.err (!%p822_p9)
}
  0x29   : > { %721 = dma.hbm_to_vmem [thread:$0]  (!%p1011_p11), %s1178_s3, 2048, %s192_s6, [#allocation6], %s1182_s8, %s1182_s8, %s927_s9  }
  0x2a   : > { %s1040_s15 = sadd.s32 1, %s922_s21   ;;  %s29_s16 = sadd.s32 1, %s918_s20 }
  0x2b   : > { %s26_s17 = ssub.s32 %s922_s21, %s1040_s15  ;;  %p36_p12 = scmp.ne.s32.totalorder %s918_s20, %s914_s19 }
  0x2c   : > { %p27_p13 = scmp.eq.s32.totalorder %s26_s17, 0  ;;  %p37_p0 = scmp.eq.s32.totalorder %s922_s21, 0 }
  0x2d   : > { %p1050_p5 = por %p150_p2, %p36_p12  ;;  %p732_p10 = scmp.lt.s32.totalorder %s922_s21, 2 }
  0x2e   : > { %s1056_s27 = scalar_select %p27_p13, %s918_s20, %s29_s16  }
  0x2f   : > { %s1190_s23 = scalar_select %p1050_p5, 1, 0 }
  0x30   : > { %p38_p3 = por %p37_p0, %p36_p12  ;;  %s208_s28 = sand.u32 1, %s918_s20  }
  0x31   : > { %s590_s29 = sshll.u32 %s208_s28, 4  ;;  %s607_s30 = sshll.u32 %s922_s21, 8 }
  0x32   : > { %s1063_s10 = scalar_lea.hbm %s1175_s0, %s607_s30  ;;  %s212_s11 = scalar_lea.vmem [#allocation2], %s590_s29 }
  0x33   : > { %s219_s12 = sshll.u32 %s212_s11, 4  ;;  %p1067_p2 = pnand %p732_p10, %p38_p3  ;;  %s1065_s12 = int_to_ptr.vmem [resolvable:$true] %s219_s12 }
  0x34   : > { %s1071_s14 = scalar_lea.sflag [#allocation3], %s208_s28  ;;  %s826_s16 = scalar_lea.hbm %s1063_s10, 256 }
  0x35   : > { %p827_p11 = scmp.ne.s32.totalorder %s1063_s10, %s826_s16  ;;  %p828_p7 = pneg %p1067_p2 }
  0x36   : > { %s831_s29 = scalar_lea.hbm %s1175_s0, 512  ;;  %p832_p13 = scmp.lt.s32.totalorder %s1063_s10, %s1175_s0 }
  0x37   : > { %p829_p9 = pnand %p828_p7, %p827_p11  ;;  %p833_p0 = scmp.lt.s32.totalorder %s831_s29, %s826_s16 }
  0x39   : > { %p830_p12 = pneg %p829_p9  ;;  %p834_p10 = por %p833_p0, %p832_p13 }
  0x3b   : > { %p835_p3 = pnand %p834_p10, %p830_p12 }
  0x3d   : > { %838 = shalt.err (!%p835_p3)
}
  0x3e   : > { %s839_s28 = scalar_lea.vmem %s1065_s12, 256  ;;  %s928_s11 = smov [#allocation2]  }
  0x3f   : > { %p840_p1 = scmp.ne.s32.totalorder %s1065_s12, %s839_s28  ;;  %s844_s8 = sshll.u32 %s928_s11, 4  ;;  %s845_s8 = int_to_ptr.vmem [resolvable:$false] %s844_s8 }
  0x40   : > { %s846_s17 = scalar_lea.vmem %s845_s8, 512  ;;  %p847_p9 = scmp.lt.s32.totalorder %s1065_s12, %s845_s8 }
  0x41   : > { %p842_p6 = pnand %p840_p1, %p828_p7  ;;  %p848_p5 = scmp.lt.s32.totalorder %s846_s17, %s839_s28 }
  0x43   : > { %p843_p11 = pneg %p842_p6  ;;  %p849_p4 = por %p848_p5, %p847_p9 }
  0x45   : > { %p850_p8 = pnand %p849_p4, %p843_p11 }
  0x47   : > { %853 = shalt.err (!%p850_p8)
}
  0x48   : > { %s1192_s16 = smov 128   ;;  %p1193_p1 = scmp.ne.s32.totalorder %s1188_s26, 0 }
  0x49   : > { %725 = dma.hbm_to_vmem [thread:$0]  (!%p1067_p2), %s1063_s10, 256, %s1065_s12, %s1071_s14, %s1192_s16, %s1192_s16, %s927_s9  }
  0x4a   : > { %231 = sbr.rel (%p1193_p1) target bundleno = 519 (0x207), region = 40  ;;  %s1098_s30 = sand.u32 (!%p1193_p1), 1, %s914_s19  }
  0x4b   : > { %s594_s8 = sshll.u32 (!%p1193_p1), %s1098_s30, 4  ;;  %s234_s29 = scalar_lea.sflag (!%p1193_p1), [#allocation3], %s1098_s30 }
  0x4c   : > { %s1104_s13 = scalar_lea.vmem (!%p1193_p1), [#allocation2], %s594_s8  ;;  %p1194_p4 = scmp.ne.s32.totalorder (!%p1193_p1), %s1186_s24, 0 }
  0x4f   : > { %897 = dma.done.wait (%p1194_p4), %s234_s29, 256  }
  0x50   : > { %899 = vsyncadd (%p1194_p4), %s234_s29, 4294967040  ;;  %p1195_p6 = scmp.eq.s32.totalorder %s983_s22, 0 }
  0x52   : > { %901 = dma.done.wait (%p1195_p6), [#allocation6], 3584   ;;  %p1196_p8 = pmov %p1195_p6 }
  0x53   : > { %v287_v0 = vld [vmem:[#allocation5 + $0x58] sm:$0xff]  ;;  %v286_v1 = vld [vmem:[#allocation5 + $0x50] sm:$0xff]  ;;  %v285_v2 = vld [vmem:[#allocation5 + $0x48] sm:$0xff]  ;;  %vm295_vm0 = vcmask 785408   ;;  %s271_s12 = scalar_lea.vmem [#allocation8], %s594_s8  ;;  %s608_s6 = sshll.u32 %s983_s22, 8 }
  0x54   : > { %903 = vsyncadd (%p1196_p8), [#allocation6], 4294963712  ;;  %641 = vmatprep.subr.mxu0 %v287_v0  ;;  %v284_v3 = vld [vmem:[#allocation5 + $0x40] sm:$0xff]  ;;  %v394_v5 = vld [vmem:[#allocation7 + $0x78] sm:$0xff]  ;;  %s493_s14 = sshll.u32 %s271_s12, 4  ;;  %s1132_s11 = scalar_lea.hbm %s1180_s5, %s608_s6  ;;  %s1127_s14 = int_to_ptr.vmem [resolvable:$true] %s493_s14 }
  0x55   : > { %642 = vmatpush3.msra.mxu0 %v287_v0  ;;  %v274_v4 = vld [vmem:[%s1104_s13] sm:$0xff]  ;;  %v283_v7 = vld [vmem:[#allocation5 + $0x38] sm:$0xff]  ;;  %668 = vmatprep.subr.mxu1 %v394_v5  ;;  %v392_v8 = vld [vmem:[#allocation7 + $0x68] sm:$0xff]  ;;  %s480_s17 = scalar_lea.sflag [#allocation4], %s1098_s30  ;;  %s854_s16 = scalar_lea.vmem %s1127_s14, 256 }
  0x56   : > { %643 = vmatprep.subr.mxu0 %v286_v1  ;;  %665 = vmatprep.mubr.msk.f32.mxu0 %vm295_vm0, %v274_v4  ;;  %v393_v6 = vld [vmem:[#allocation7 + $0x70] sm:$0xff]  ;;  %v391_v10 = vld [vmem:[#allocation7 + $0x60] sm:$0xff]  ;;  %v281_v11 = vld [vmem:[#allocation5 + $0x28] sm:$0xff]  ;;  %p855_p5 = scmp.ne.s32.totalorder %s1127_s14, %s854_s16  ;;  %p1197_p2 = scmp.ne.s32.totalorder %s1190_s23, 0 }
  0x57   : > { %644 = vmatpush3.msra.mxu0 %v286_v1  ;;  %669 = vmatpush3.msra.mxu1 %v394_v5  ;;  %v282_v9 = vld [vmem:[#allocation5 + $0x30] sm:$0xff]  ;;  %v390_v12 = vld [vmem:[#allocation7 + $0x58] sm:$0xff]  ;;  %v280_v13 = vld [vmem:[#allocation5 + $0x20] sm:$0xff]  ;;  %s929_s22 = smov [#allocation8]  }
  0x58   : > { %645 = vmatprep.subr.mxu0 %v285_v2  ;;  %670 = vmatprep.subr.mxu1 %v393_v6  ;;  %v389_v14 = vld [vmem:[#allocation7 + $0x50] sm:$0xff]  ;;  %v279_v15 = vld [vmem:[#allocation5 + $0x18] sm:$0xff]  ;;  %v388_v16 = vld [vmem:[#allocation7 + $0x48] sm:$0xff]  ;;  %p856_p7 = pnand %p855_p5, %p1197_p2  ;;  %s858_s8 = sshll.u32 %s929_s22, 4  ;;  %s859_s8 = int_to_ptr.vmem [resolvable:$false] %s858_s8 }
  0x59   : > { %646 = vmatpush3.msra.mxu0 %v285_v2  ;;  %671 = vmatpush3.msra.mxu1 %v393_v6  ;;  %v278_v17 = vld [vmem:[#allocation5 + $0x10] sm:$0xff]  ;;  %v387_v18 = vld [vmem:[#allocation7 + $0x40] sm:$0xff]  ;;  %v277_v19 = vld [vmem:[#allocation5 + $0x8] sm:$0xff]  ;;  %s860_s29 = scalar_lea.vmem %s859_s8, 512  ;;  %p861_p13 = scmp.lt.s32.totalorder %s1127_s14, %s859_s8 }
  0x5a   : > { %647 = vmatprep.subr.mxu0 %v284_v3  ;;  %672 = vmatprep.subr.mxu1 %v392_v8  ;;  %v386_v20 = vld [vmem:[#allocation7 + $0x38] sm:$0xff]  ;;  %v276_v21 = vld [vmem:[#allocation5] sm:$0xff]  ;;  %v385_v22 = vld [vmem:[#allocation7 + $0x30] sm:$0xff]  ;;  %p857_p12 = pneg %p856_p7  ;;  %p862_p0 = scmp.lt.s32.totalorder %s860_s29, %s854_s16 }
  0x5b   : > { %648 = vmatpush3.msra.mxu0 %v284_v3  ;;  %673 = vmatpush3.msra.mxu1 %v392_v8  ;;  %v275_v23 = vld [vmem:[%s1104_s13 + $0x8] sm:$0xff]  ;;  %v383_v25 = vld [vmem:[#allocation7 + $0x20] sm:$0xff]  ;;  %v381_v27 = vld [vmem:[#allocation7 + $0x10] sm:$0xff] }
  0x5c   : > { %649 = vmatprep.subr.mxu0 %v283_v7  ;;  %674 = vmatprep.subr.mxu1 %v391_v10  ;;  %v384_v24 = vld [vmem:[#allocation7 + $0x28] sm:$0xff]  ;;  %v382_v26 = vld [vmem:[#allocation7 + $0x18] sm:$0xff]  ;;  %v379_v29 = vld [vmem:[#allocation7] sm:$0xff]  ;;  %p863_p10 = por %p862_p0, %p861_p13 }
  0x5d   : > { %650 = vmatpush3.msra.mxu0 %v283_v7  ;;  %675 = vmatpush3.msra.mxu1 %v391_v10  ;;  %v380_v28 = vld [vmem:[#allocation7 + $0x8] sm:$0xff]  ;;  %v598_v30 = vld [vmem:[%s1177_s2] ss:$0 sm:$0xff] }
  0x5e   : > { %651 = vmatprep.subr.mxu0 %v282_v9  ;;  %676 = vmatprep.subr.mxu1 %v390_v12  ;;  %v601_v37 = vld [vmem:[%s1179_s4] ss:$0 sm:$0xff]  ;;  %p864_p3 = pnand %p863_p10, %p857_p12 }
  0x5f   : > { %652 = vmatpush3.msra.mxu0 %v282_v9  ;;  %677 = vmatpush3.msra.mxu1 %v390_v12 }
  0x60   : > { %653 = vmatprep.subr.mxu0 %v281_v11  ;;  %678 = vmatprep.subr.mxu1 %v389_v14 }
  0x61   : > { %654 = vmatpush3.msra.mxu0 %v281_v11  ;;  %679 = vmatpush3.msra.mxu1 %v389_v14 }
  0x62   : > { %655 = vmatprep.subr.mxu0 %v280_v13  ;;  %680 = vmatprep.subr.mxu1 %v388_v16 }
  0x63   : > { %656 = vmatpush3.msra.mxu0 %v280_v13  ;;  %681 = vmatpush3.msra.mxu1 %v388_v16 }
  0x64   : > { %657 = vmatprep.subr.mxu0 %v279_v15  ;;  %682 = vmatprep.subr.mxu1 %v387_v18 }
  0x65   : > { %658 = vmatpush3.msra.mxu0 %v279_v15  ;;  %683 = vmatpush3.msra.mxu1 %v387_v18 }
  0x66   : > { %659 = vmatprep.subr.mxu0 %v278_v17  ;;  %684 = vmatprep.subr.mxu1 %v386_v20 }
  0x67   : > { %660 = vmatpush3.msra.mxu0 %v278_v17  ;;  %685 = vmatpush3.msra.mxu1 %v386_v20 }
  0x68   : > { %661 = vmatprep.subr.mxu0 %v277_v19  ;;  %686 = vmatprep.subr.mxu1 %v385_v22 }
  0x69   : > { %662 = vmatpush3.msra.mxu0 %v277_v19  ;;  %687 = vmatpush3.msra.mxu1 %v385_v22 }
  0x6a   : > { %663 = vmatprep.subr.mxu0 %v276_v21  ;;  %688 = vmatprep.subr.mxu1 %v384_v24 }
  0x6b   : > { %664 = vmatpush3.msra.mxu0 %v276_v21  ;;  %689 = vmatpush3.msra.mxu1 %v384_v24 }
  0x6c   : > { %666 = vmatmul.mubr.msk.f32.vlgmr.msra.gmra.mxu0 %vm295_vm0, %v275_v23  ;;  %690 = vmatprep.subr.mxu1 %v383_v25 }
  0x6d   : > { %691 = vmatpush3.msra.mxu1 %v383_v25 }
  0x6e   : > { %692 = vmatprep.subr.mxu1 %v382_v26 }
  0x6f   : > { %693 = vmatpush3.msra.mxu1 %v382_v26 }
  0x70   : > { %694 = vmatprep.subr.mxu1 %v381_v27 }
  0x71   : > { %695 = vmatpush3.msra.mxu1 %v381_v27 }
  0x72   : > { %696 = vmatprep.subr.mxu1 %v380_v28 }
  0x73   : > { %697 = vmatpush3.msra.mxu1 %v380_v28 }
  0x74   : > { %698 = vmatprep.subr.mxu1 %v379_v29 }
  0x75   : > { %699 = vmatpush3.msra.mxu1 %v379_v29 }
 0x12c   : > { %v667_v31 = vpop.f32.mrf.mxu0 }
 0x12d   : > { %v374_v32 = vadd.f32 %v667_v31, %v598_v30 }
 0x12e   : > { %v368_v33 = vpop.f32.mrf.mxu0 }
 0x12f   : > { %v369_v34 = vadd.f32 %v598_v30, %v368_v33  ;;  %v378_v36 = vmax.f32 %v374_v32, 0.0 }
 0x131   : > { %v377_v35 = vmax.f32 %v369_v34, 0.0 }
 0x133   : > { %700 = vmatprep.mubr.f32.mxu1 %v377_v35 }
 0x134   : > { %701 = vmatmul.mubr.f32.vlgmr.msra.gmra.mxu1 %v378_v36 }
 0x1f4   : > { %v702_v38 = vpop.f32.mrf.mxu1 }
 0x1f5   : > { %v474_v39 = vadd.f32 %v702_v38, %v601_v37 }
 0x1f6   : > { %v468_v40 = vpop.f32.mrf.mxu1 }
 0x1f7   : > { %478 = vst [vmem:[%s271_s12 + $0x8] sm:$0xff] %v474_v39  ;;  %v469_v41 = vadd.f32 %v601_v37, %v468_v40 }
 0x1f9   : > { %477 = vst [vmem:[%s271_s12] sm:$0xff] %v469_v41 }
 0x1fa   : > { %867 = shalt.err (!%p864_p3)
}
 0x1fb   : > { %s868_s13 = scalar_lea.hbm %s1132_s11, 256  ;;  %s872_s9 = scalar_lea.hbm %s1180_s5, 512 }
 0x1fc   : > { %p869_p11 = scmp.ne.s32.totalorder %s1132_s11, %s868_s13  ;;  %p873_p4 = scmp.lt.s32.totalorder %s1132_s11, %s1180_s5 }
 0x1fd   : > { %p874_p6 = scmp.lt.s32.totalorder %s872_s9, %s868_s13 }
 0x1fe   : > { %p870_p9 = pnand %p869_p11, %p1197_p2 }
 0x1ff   : > { %p875_p8 = por %p874_p6, %p873_p4 }
 0x200   : > { %p871_p1 = pneg %p870_p9 }
 0x202   : > { %p876_p5 = pnand %p875_p8, %p871_p1 }
 0x204   : > { %879 = shalt.err (!%p876_p5)
}
 0x205   : > { %s930_s6 = smov 128   ;;  %s931_s7 = smov 8  }
 0x206   : > { %713 = dma.vmem_to_hbm [thread:$0]  (%p1197_p2), %s1127_s14, 256, %s1132_s11, %s480_s17, %s930_s6, %s930_s6, %s931_s7  }
 0x207 PF: > { %s508_s28 = sand.u32 1, %s910_s18   ;;  %p1198_p7 = scmp.ne.s32.totalorder %s1187_s25, 0 }
 0x208   : > { %p1199_p12 = scmp.ge.s32.totalorder %s922_s21, 2  ;;  %s509_s16 = scalar_lea.sflag [#allocation4], %s508_s28 }
 0x20a   : > { %p727_p13 = pnand %p1199_p12, %p1198_p7 }
 0x20c   : > { %p728_p0 = pneg %p727_p13 }
 0x20e   : > { %905 = dma.done.wait (%p728_p0), %s509_s16, 256  }
 0x20f   : > { %907 = vsyncadd (%p728_p0), %s509_s16, 4294967040  ;;  %p19_p10 = scmp.ge.s32.totalorder %s1040_s15, 4   ;;  %s1200_s18 = smov %s914_s19 }
 0x210   : > { %s1201_s19 = smov %s918_s20  ;;  %s1202_s20 = smov %s1056_s27 }
 0x211   : > { %s1203_s21 = smov %s1040_s15  ;;  %21 = sbr.rel (!%p19_p10) target bundleno = 6 (0x6), region = 93 }
 0x216   :  { %514 = vsyncpa [#allocation3], 1 }
 0x217   :  { %516 = vsyncpa [#allocation3 + $0x1], 1 }
 0x218   :  { %517 = vsyncpa [#allocation6], 1 }
 0x219   :  { %518 = vsyncpa [#allocation4], 1 }
 0x21a   :  { %520 = vsyncpa [#allocation4 + $0x1], 1 }

</bundles_post_ra>
